<compile_context>
chip_gen: v5e
topology: v5e:2x2
jax: 0.10.0
libtpu: 0.0.40
codegen_flags: <defaults>
</compile_context>

<pallas_src>
import functools

import jax
import jax.numpy as jnp
from jax.experimental import pallas as pl
from jax.experimental.pallas import tpu as pltpu


D_IN, D_HID, D_OUT = 64, 32, 10


def _round_up(n, m):
    return ((n + m - 1) // m) * m


def mlp_kernel(x_ref, w1_ref, b1_ref, w2_ref, b2_ref, out_ref):
    # In-kernel cast to bf16 (hidden under the DMA); f32 accumulation on the MXU.
    x = x_ref[...].astype(jnp.bfloat16)
    h = jnp.dot(x, w1_ref[...], preferred_element_type=jnp.float32)
    h = jnp.maximum(h + b1_ref[...], 0.0)                       # b1 is (1, 32)
    y = jnp.dot(h.astype(w2_ref.dtype), w2_ref[...],
                preferred_element_type=jnp.float32)
    out_ref[...] = (y + b2_ref[...]).astype(out_ref.dtype)      # b2 is (1, 10)


def prepare_params(w1, b1, w2, b2):
    """One-time parameter prep: transpose torch (out,in) -> (in,out), cast.

    w1: (32, 64), b1: (32,), w2: (10, 32), b2: (10,)  (torch layouts).
    """
    w1_t = jnp.asarray(w1.T, dtype=jnp.bfloat16)                      # (64, 32)
    b1_2d = jnp.asarray(b1, dtype=jnp.float32).reshape(1, D_HID)      # (1, 32)
    w2_t = jnp.asarray(w2.T, dtype=jnp.bfloat16)                      # (32, 10)
    b2_2d = jnp.asarray(b2, dtype=jnp.float32).reshape(1, D_OUT)      # (1, 10)
    return w1_t, b1_2d, w2_t, b2_2d


@functools.partial(jax.jit, static_argnames=("tile_b",))
def mlp_forward(x, w1_t, b1_2d, w2_t, b2_2d, *, tile_b=4096):
    """x: (B, 64) f32/bf16; params from prepare_params(). Returns (B, 10) f32."""
    B = x.shape[0]

    # Batch tile: large enough to amortize the ~0.35 us per-grid-step overhead,
    # clamped (rounded to the 8-sublane multiple) for tiny B.
    tb = min(tile_b, _round_up(max(B, 1), 8))
    grid = (pl.cdiv(B, tb),)

    cost = pl.CostEstimate(
        flops=2 * B * D_IN * D_HID + 2 * B * D_HID * D_OUT,
        transcendentals=0,
        bytes_accessed=(B * D_IN * x.dtype.itemsize        # x stream
                        + D_IN * D_HID * 2 + D_HID * 4     # w1, b1
                        + D_HID * D_OUT * 2 + D_OUT * 4    # w2, b2
                        + B * D_OUT * 4),                  # output (f32)
    )

    out = pl.pallas_call(
        mlp_kernel,
        out_shape=jax.ShapeDtypeStruct((B, D_OUT), jnp.float32),
        grid_spec=pltpu.PrefetchScalarGridSpec(
            num_scalar_prefetch=0,
            grid=grid,
            in_specs=[
                pl.BlockSpec((tb, D_IN), lambda i: (i, 0)),        # streamed x tiles
                pl.BlockSpec((D_IN, D_HID), lambda i: (0, 0)),     # resident weights
                pl.BlockSpec((1, D_HID), lambda i: (0, 0)),
                pl.BlockSpec((D_HID, D_OUT), lambda i: (0, 0)),
                pl.BlockSpec((1, D_OUT), lambda i: (0, 0)),
            ],
            out_specs=pl.BlockSpec((tb, D_OUT), lambda i: (i, 0)),
        ),
        compiler_params=pltpu.CompilerParams(
            dimension_semantics=("parallel",),   # lets v7x shard batch over 2 TCs
        ),
        cost_estimate=cost,
    )(x, w1_t, b1_2d, w2_t, b2_2d)

    return out


if __name__ == "__main__":
    # NOTE: at this toy batch size plain XLA is at least as fast (fixed call
    # overhead dominates); the Pallas path pays off at large B.
    key = jax.random.PRNGKey(0)
    k_x, k_w1, k_b1, k_w2, k_b2 = jax.random.split(key, 5)

    B = 8
    x = jax.random.normal(k_x, (B, D_IN), dtype=jnp.float32)

    # Deterministic parameter init (mimics nn.Linear's uniform(-1/sqrt(fan_in), .))
    lim1 = 1.0 / jnp.sqrt(D_IN)
    w1 = jax.random.uniform(k_w1, (D_HID, D_IN), jnp.float32, -lim1, lim1)  # (out,in)
    b1 = jax.random.uniform(k_b1, (D_HID,), jnp.float32, -lim1, lim1)
    lim2 = 1.0 / jnp.sqrt(D_HID)
    w2 = jax.random.uniform(k_w2, (D_OUT, D_HID), jnp.float32, -lim2, lim2)
    b2 = jax.random.uniform(k_b2, (D_OUT,), jnp.float32, -lim2, lim2)

    params = prepare_params(w1, b1, w2, b2)
    y = mlp_forward(x, *params)
    y = jax.block_until_ready(y)

    # Reference in plain f32 JAX; bf16 matmul inputs loosen the tolerance.
    h_ref = jnp.maximum(x @ w1.T + b1, 0.0)
    y_ref = h_ref @ w2.T + b2
    assert y.shape == (B, D_OUT)
    assert jnp.allclose(y, y_ref, atol=5e-2, rtol=5e-2), (
        jnp.max(jnp.abs(y - y_ref)))

    print("KERNEL_OK")
</pallas_src>

<mosaic_0001>
module attributes {stable_mosaic.version = 11 : i64} {
  func.func @mlp_kernel(%arg0: i32, %arg1: memref<8x64xf32, #tpu.memory_space<vmem>>, %arg2: memref<64x32xbf16, #tpu.memory_space<vmem>>, %arg3: memref<1x32xf32, #tpu.memory_space<vmem>>, %arg4: memref<32x10xbf16, #tpu.memory_space<vmem>>, %arg5: memref<1x10xf32, #tpu.memory_space<vmem>>, %arg6: memref<8x10xf32, #tpu.memory_space<vmem>>) attributes {dimension_semantics = [#tpu.dimension_semantics<parallel>], iteration_bounds = array<i64: 1>, scalar_prefetch = 0 : i64, scratch_operands = 0 : i64, tpu.core_type = #tpu.core_type<tc>, window_params = [{transform_indices = @transform_0, window_bounds = array<i64: 8, 64>}, {pipeline_mode = #tpu.pipeline_mode<synchronous>, transform_indices = @transform_1, window_bounds = array<i64: 64, 32>}, {pipeline_mode = #tpu.pipeline_mode<synchronous>, transform_indices = @transform_2, window_bounds = array<i64: 1, 32>}, {pipeline_mode = #tpu.pipeline_mode<synchronous>, transform_indices = @transform_3, window_bounds = array<i64: 32, 10>}, {pipeline_mode = #tpu.pipeline_mode<synchronous>, transform_indices = @transform_4, window_bounds = array<i64: 1, 10>}, {transform_indices = @transform_5, window_bounds = array<i64: 8, 10>}]} {
    %c0 = arith.constant 0 : index
    %c0_0 = arith.constant 0 : index
    %0 = vector.load %arg1[%c0, %c0_0] : memref<8x64xf32, #tpu.memory_space<vmem>>, vector<8x64xf32>
    %1 = arith.truncf %0 : vector<8x64xf32> to vector<8x64xbf16>
    %c0_1 = arith.constant 0 : index
    %c0_2 = arith.constant 0 : index
    %2 = vector.load %arg2[%c0_1, %c0_2] : memref<64x32xbf16, #tpu.memory_space<vmem>>, vector<64x32xbf16>
    %cst = arith.constant dense<0.000000e+00> : vector<8x32xf32>
    %3 = tpu.matmul %1, %2, %cst {dimension_numbers = #tpu.dot_dimension_numbers<[1], [0], [0], [1], [0, 0, 1, 1], [], []>} : vector<8x64xbf16>, vector<64x32xbf16>, vector<8x32xf32> -> vector<8x32xf32>
    %c0_3 = arith.constant 0 : index
    %c0_4 = arith.constant 0 : index
    %4 = vector.load %arg3[%c0_3, %c0_4] : memref<1x32xf32, #tpu.memory_space<vmem>>, vector<1x32xf32>
    %5 = vector.broadcast %4 : vector<1x32xf32> to vector<8x32xf32>
    %6 = arith.addf %3, %5 : vector<8x32xf32>
    %cst_5 = arith.constant 0.000000e+00 : f32
    %7 = vector.broadcast %cst_5 : f32 to vector<8x32xf32>
    %8 = arith.maximumf %6, %7 : vector<8x32xf32>
    %9 = arith.truncf %8 : vector<8x32xf32> to vector<8x32xbf16>
    %c0_6 = arith.constant 0 : index
    %c0_7 = arith.constant 0 : index
    %10 = vector.load %arg4[%c0_6, %c0_7] : memref<32x10xbf16, #tpu.memory_space<vmem>>, vector<32x10xbf16>
    %cst_8 = arith.constant dense<0.000000e+00> : vector<8x10xf32>
    %11 = tpu.matmul %9, %10, %cst_8 {dimension_numbers = #tpu.dot_dimension_numbers<[1], [0], [0], [1], [0, 0, 1, 1], [], []>} : vector<8x32xbf16>, vector<32x10xbf16>, vector<8x10xf32> -> vector<8x10xf32>
    %c0_9 = arith.constant 0 : index
    %c0_10 = arith.constant 0 : index
    %12 = vector.load %arg5[%c0_9, %c0_10] : memref<1x10xf32, #tpu.memory_space<vmem>>, vector<1x10xf32>
    %13 = vector.broadcast %12 : vector<1x10xf32> to vector<8x10xf32>
    %14 = arith.addf %11, %13 : vector<8x10xf32>
    %c0_11 = arith.constant 0 : index
    %c0_12 = arith.constant 0 : index
    %15 = vector.load %arg6[%c0_11, %c0_12] : memref<8x10xf32, #tpu.memory_space<vmem>>, vector<8x10xf32>
    tpu.vector_store %arg6[%c0_11, %c0_12], %14 {strides = array<i32>} : memref<8x10xf32, #tpu.memory_space<vmem>>, vector<8x10xf32>,
    return
  }
  func.func @transform_0(%arg0: i32) -> (i32, i32) {
    %c0_i32 = arith.constant 0 : i32
    %c0_i32_0 = arith.constant 0 : i32
    return %arg0, %c0_i32 : i32, i32
  }
  func.func @transform_1(%arg0: i32) -> (i32, i32) {
    %c0_i32 = arith.constant 0 : i32
    %c0_i32_0 = arith.constant 0 : i32
    %c0_i32_1 = arith.constant 0 : i32
    return %c0_i32, %c0_i32_0 : i32, i32
  }
  func.func @transform_2(%arg0: i32) -> (i32, i32) {
    %c0_i32 = arith.constant 0 : i32
    %c0_i32_0 = arith.constant 0 : i32
    %c0_i32_1 = arith.constant 0 : i32
    return %c0_i32, %c0_i32_0 : i32, i32
  }
  func.func @transform_3(%arg0: i32) -> (i32, i32) {
    %c0_i32 = arith.constant 0 : i32
    %c0_i32_0 = arith.constant 0 : i32
    %c0_i32_1 = arith.constant 0 : i32
    return %c0_i32, %c0_i32_0 : i32, i32
  }
  func.func @transform_4(%arg0: i32) -> (i32, i32) {
    %c0_i32 = arith.constant 0 : i32
    %c0_i32_0 = arith.constant 0 : i32
    %c0_i32_1 = arith.constant 0 : i32
    return %c0_i32, %c0_i32_0 : i32, i32
  }
  func.func @transform_5(%arg0: i32) -> (i32, i32) {
    %c0_i32 = arith.constant 0 : i32
    %c0_i32_0 = arith.constant 0 : i32
    return %arg0, %c0_i32 : i32, i32
  }
}

</mosaic_0001>

<bundles_post_ra>
// kernel: mlp_forward.1
= control target key start
LH: loop header
LB: loop body
LE: loop exit
PB: predicated region body
PF: predicated region fallthrough
CT: control target
= control target key end

     0   :  { %s256_s0 = inlined_call_operand.vmem [shape: f32[8,64], index: 0, kind: input, shape index: {}]   ;;  %s257_s1 = inlined_call_operand.vmem [shape: bf16[64,32], index: 1, kind: input, shape index: {}]   ;;  %s258_s2 = inlined_call_operand.vmem [shape: f32[1,32], index: 2, kind: input, shape index: {}]   ;;  %s259_s3 = inlined_call_operand.vmem [shape: bf16[32,10], index: 3, kind: input, shape index: {}]   ;;  %s260_s4 = inlined_call_operand.vmem [shape: f32[1,10], index: 4, kind: input, shape index: {}]   ;;  %s261_s5 = inlined_call_operand.hbm [shape: f32[8,10], index: 5, kind: output, shape index: {}]  }
   0x1   :  { %v163_v0 = vld [vmem:[%s257_s1 + $0x18] sm:$0xff]  ;;  %v162_v1 = vld [vmem:[%s257_s1 + $0x10] sm:$0xff] }
   0x2   :  { %68 = vmatpush.bf16.msra.mxu0 %v163_v0 }
   0x3   :  { %10 = vsyncpa [#allocation3], 0  ;;  %v161_v2 = vld [vmem:[%s257_s1 + $0x8] sm:$0xff]  ;;  %v160_v3 = vld [vmem:[%s257_s1] sm:$0xff]  ;;  %vm60_vm0 = vcmask 523264   ;;  %vm99_vm1 = vcmask 261120  }
   0x4   :  { %v22_v4 = vld [vmem:[%s256_s0] sm:$0xff]  ;;  %v165_v6 = vld [vmem:[%s259_s3 + $0x8] sm:$0xff]  ;;  %s195_s9 = smov [#allocation2]   ;;  %s125_s12 = sshll.u32 %s261_s5, 4  ;;  %vm116_vm2 = vcmask 80896   ;;  %s126_s12 = int_to_ptr.hbm [resolvable:$true] %s125_s12 }
   0x5   :  { %v23_v5 = vpack.c.bf16 %v22_v4, %v22_v4  ;;  %109 = vmatpush.bf16.msra.mxu1 %v165_v6  ;;  %v164_v7 = vld [vmem:[%s259_s3] sm:$0xff]  ;;  %s123_s10 = sshll.u32 %s195_s9, 4  ;;  %s124_s10 = int_to_ptr.vmem [resolvable:$true] %s123_s10 }
   0x6   :  { %69 = vmatpush.bf16.msra.mxu0 %v162_v1  ;;  %v167_v8 = vld [vmem:[%s258_s2] ss:$0 sm:$0xff] }
   0x7   :  { %v168_v14 = vld [vmem:[%s260_s4] ss:$0 sm:$0xff] }
   0x9   :  { %110 = vmatpush.bf16.msra.mxu1 %v164_v7 }
   0xa   :  { %70 = vmatpush.bf16.msra.mxu0 %v161_v2 }
   0xe   :  { %71 = vmatpush.bf16.msra.mxu0 %v160_v3 }
  0x11   :  { %150 = vmatmul.msk.bf16.vlgmr.msra.gmra.mxu0 %vm60_vm0, %v23_v5 }
  0x8e   :  { %v73_v9 = vpop.f32.mrf.mxu0 }
  0x8f   :  { %v74_v10 = vadd.f32 %v167_v8, %v73_v9 }
  0x91   :  { %v77_v11 = vmax.f32 %v74_v10, 0.0 }
  0x93   :  { %v78_v12 = vpack.c.bf16 %v77_v11, %v77_v11 }
  0x95   :  { %159 = vmatmul.msk.bf16.vlgmr.msra.gmra.mxu1 %vm99_vm1, %v78_v12 }
  0x96   :  { %v75_v13 = vpop.f32.mrf.mxu0 }
 0x112   :  { %v112_v15 = vpop.f32.mrf.mxu1 }
 0x113   :  { %v113_v16 = vadd.f32 %v168_v14, %v112_v15 }
 0x115   :  { %117 = vst.msk [vmem:[#allocation2] sm:$0xff] %vm116_vm2, %v113_v16 }
 0x116   :  { %128 = dma.vmem_to_hbm [thread:$0]  %s124_s10, 128, %s126_s12, [#allocation3]  }
 0x11a   :  { %v114_v17 = vpop.f32.mrf.mxu1 }
 0x11b   :  { %193 = dma.done.wait [#allocation3], 128  }
 0x11c   :  { %194 = vsyncadd [#allocation3], 4294967168 }
 0x11d   :  { %133 = vsyncpa [#allocation3], 1 }

</bundles_post_ra>
